<compile_context>
chip_gen: v7x
topology: tpu7x:2x2x1
jax: 0.10.0
libtpu: 0.0.40
codegen_flags: <defaults>
</compile_context>

<pallas_src>
import functools

import jax
import jax.numpy as jnp
from jax.experimental import pallas as pl
from jax.experimental.pallas import tpu as pltpu

_LANES = 128
_DEFAULT_BLOCK_ROWS = 1024      # 1024 x 128 f32 = 512 KiB per input block
_E = 0.5


def _prep_2d(x):
    """Flatten to (rows, 128) keeping the *native* dtype.

    Free (no copy) whenever numel % 128 == 0 (typical image tensors); otherwise a
    small zero lane-pad is added (zeros are neutral for both reductions since the
    mask is padded with zeros too).
    """
    flat = x.reshape(-1)
    n = flat.shape[0]
    rem = n % _LANES
    if rem:
        flat = jnp.pad(flat, (0, _LANES - rem))
    return flat.reshape(-1, _LANES)


# ---------------------------------------------------------------------------
# Fused kernel (masked path):
#   out_sq[c]  <- per-lead sum(((pred - target) * mask)^2)   (scalar at [0, 0])
#   out_m[c]   <- per-lead sum(mask)                          (scalar at [0, 0])
#   out_y[0]   <- sum((y_hat - y)^2)                          (lead 0 only)
# ---------------------------------------------------------------------------
def _fused_kernel(t_ref, p_ref, m_ref, yh_ref, yy_ref,
                  out_sq_ref, out_m_ref, out_y_ref,
                  acc_sq_ref, acc_m_ref,
                  *, total_rows, steps_per_lead):
    c = pl.program_id(0)          # lead ("core") axis -- parallel
    k = pl.program_id(1)          # reduction axis     -- arbitrary (sequential)
    block_rows = acc_sq_ref.shape[0]

    @pl.when(k == 0)
    def _():
        acc_sq_ref[...] = jnp.zeros_like(acc_sq_ref)
        acc_m_ref[...] = jnp.zeros_like(acc_m_ref)

    # Row-validity mask: handles the partial tail block and the duplicated
    # (clamped) block when num_lead * steps_per_lead over-covers the row range.
    row0 = (c * steps_per_lead + k) * block_rows
    row_ids = jax.lax.broadcasted_iota(jnp.int32, (block_rows, _LANES), 0) + row0
    valid = row_ids < total_rows

    # Native-dtype loads, f32 math; per-step work is pure element-wise VPU adds
    # into a vector VMEM accumulator (no per-step cross-lane reduction).
    t = t_ref[...].astype(jnp.float32)
    p = p_ref[...].astype(jnp.float32)
    m = m_ref[...].astype(jnp.float32)
    d = (p - t) * m
    zeros = jnp.zeros_like(d)
    acc_sq_ref[...] += jnp.where(valid, d * d, zeros)
    acc_m_ref[...] += jnp.where(valid, m, zeros)

    @pl.when(k == pl.num_programs(1) - 1)
    def _():
        ri = jax.lax.broadcasted_iota(jnp.int32, (8, _LANES), 0)
        ci = jax.lax.broadcasted_iota(jnp.int32, (8, _LANES), 1)
        onehot = (ri == 0) & (ci == 0)
        zeros8 = jnp.zeros((8, _LANES), jnp.float32)
        out_sq_ref[...] = jnp.where(onehot, jnp.sum(acc_sq_ref[...]), zeros8)
        out_m_ref[...] = jnp.where(onehot, jnp.sum(acc_m_ref[...]), zeros8)
        # Tiny y_hat/y MSE numerator, fused in (only lead 0 reports a value).
        dy = yh_ref[...].astype(jnp.float32) - yy_ref[...].astype(jnp.float32)
        out_y_ref[...] = jnp.where(onehot & (c == 0), jnp.sum(dy * dy), zeros8)


@functools.partial(jax.jit, static_argnames=("block_rows",))
def _fused_loss(target, pred, mask, y_hat, y, block_rows=_DEFAULT_BLOCK_ROWS):
    t2d = _prep_2d(target)
    p2d = _prep_2d(pred)
    m2d = _prep_2d(mask)
    yh2 = y_hat.reshape(1, -1)     # small regression head; full-array block
    yy2 = y.reshape(1, -1)

    total_rows = t2d.shape[0]
    cap = max(8, (int(block_rows) // 8) * 8)
    br = total_rows if total_rows <= cap else cap          # full dim or mult-of-8
    total_blocks = pl.cdiv(total_rows, br)
    num_lead = 2 if total_blocks >= 2 else 1                # both TCs on v7x
    steps_per_lead = pl.cdiv(total_blocks, num_lead)

    def data_map(c, k):
        blk = c * steps_per_lead + k
        return (jnp.minimum(blk, total_blocks - 1), 0)      # never fully OOB

    kern = functools.partial(_fused_kernel, total_rows=total_rows,
                             steps_per_lead=steps_per_lead)

    out_sq, out_m, out_y = pl.pallas_call(
        kern,
        out_shape=[jax.ShapeDtypeStruct((num_lead * 8, _LANES), jnp.float32)] * 3,
        grid_spec=pltpu.PrefetchScalarGridSpec(
            num_scalar_prefetch=0,
            grid=(num_lead, steps_per_lead),
            in_specs=[
                pl.BlockSpec((br, _LANES), data_map),
                pl.BlockSpec((br, _LANES), data_map),
                pl.BlockSpec((br, _LANES), data_map),
                pl.BlockSpec(yh2.shape, lambda c, k: (0, 0)),
                pl.BlockSpec(yy2.shape, lambda c, k: (0, 0)),
            ],
            out_specs=[
                pl.BlockSpec((8, _LANES), lambda c, k: (c, 0)),
                pl.BlockSpec((8, _LANES), lambda c, k: (c, 0)),
                pl.BlockSpec((8, _LANES), lambda c, k: (c, 0)),
            ],
            scratch_shapes=[pltpu.VMEM((br, _LANES), jnp.float32)] * 2,
        ),
        compiler_params=pltpu.CompilerParams(
            dimension_semantics=("parallel", "arbitrary")),
    )(t2d, p2d, m2d, yh2, yy2)

    x_loss = jnp.sum(out_sq) / jnp.sum(out_m)
    y_loss = jnp.sum(out_y) / jnp.float32(y.size)
    e = jnp.float32(_E)
    return x_loss * e + y_loss * (jnp.float32(1.0) - e)


# ---------------------------------------------------------------------------
# No-mask path: single-step kernel over the (small) y_hat / y tensors.
# ---------------------------------------------------------------------------
def _y_mse_kernel(yh_ref, yy_ref, out_ref):
    dy = yh_ref[...].astype(jnp.float32) - yy_ref[...].astype(jnp.float32)
    out_ref[0, 0] = jnp.sum(dy * dy)


@jax.jit
def _y_only_loss(y_hat, y):
    yh2 = y_hat.reshape(1, -1)
    yy2 = y.reshape(1, -1)
    out = pl.pallas_call(
        _y_mse_kernel,
        out_shape=jax.ShapeDtypeStruct((1, 1), jnp.float32),
        grid_spec=pltpu.PrefetchScalarGridSpec(
            num_scalar_prefetch=0,
            grid=(1,),
            in_specs=[
                pl.BlockSpec(yh2.shape, lambda i: (0, 0)),
                pl.BlockSpec(yy2.shape, lambda i: (0, 0)),
            ],
            out_specs=pl.BlockSpec(memory_space=pltpu.SMEM),
        ),
        compiler_params=pltpu.CompilerParams(
            dimension_semantics=("arbitrary",)),
    )(yh2, yy2)
    return out[0, 0] / jnp.float32(y_hat.size)


def fusion_mse_loss(target, pred, y_hat, y, mask=None, *,
                    block_rows=_DEFAULT_BLOCK_ROWS):
    if mask is None:
        return _y_only_loss(y_hat, y)
    return _fused_loss(target, pred, mask, y_hat, y, block_rows=block_rows)


if __name__ == "__main__":
    def ref_loss(target, pred, y_hat, y, mask=None):
        y_loss = jnp.mean((y_hat.astype(jnp.float32) - y.astype(jnp.float32)) ** 2)
        if mask is None:
            return y_loss
        x_loss = (jnp.sum((((pred - target) * mask).astype(jnp.float32)) ** 2)
                  / jnp.sum(mask.astype(jnp.float32)))
        return 0.5 * x_loss + 0.5 * y_loss

    # --- primary small case: (2, 4, 16, 16) images, (2, 8) regression head ----
    k1, k2, k3, k4, k5 = jax.random.split(jax.random.PRNGKey(0), 5)
    B, C, H, W = 2, 4, 16, 16
    target = jax.random.normal(k1, (B, C, H, W), jnp.float32)
    pred = jax.random.normal(k2, (B, C, H, W), jnp.float32)
    y_hat = jax.random.normal(k3, (B, 8), jnp.float32)
    y = jax.random.normal(k4, (B, 8), jnp.float32)
    mask = (jax.random.uniform(k5, (B, C, H, W)) > 0.5).astype(jnp.float32)

    got_masked = fusion_mse_loss(target, pred, y_hat, y, mask)
    got_plain = fusion_mse_loss(target, pred, y_hat, y, None)
    jax.block_until_ready((got_masked, got_plain))
    assert jnp.allclose(got_masked, ref_loss(target, pred, y_hat, y, mask),
                        rtol=1e-5, atol=1e-5)
    assert jnp.allclose(got_plain, ref_loss(target, pred, y_hat, y),
                        rtol=1e-5, atol=1e-5)

    # --- secondary case: non-128-multiple numel, partial tail block, and a small
    #     forced block size so the multi-block / 2-lead grid path is exercised ---
    k1, k2, k3, k4, k5 = jax.random.split(jax.random.PRNGKey(1), 5)
    shp = (2, 3, 50, 33)    # 9900 elements -> lane pad + partial + clamped block
    target2 = jax.random.normal(k1, shp, jnp.float32)
    pred2 = jax.random.normal(k2, shp, jnp.float32)
    y_hat2 = jax.random.normal(k3, (2, 10), jnp.float32)
    y2 = jax.random.normal(k4, (2, 10), jnp.float32)
    mask2 = (jax.random.uniform(k5, shp) > 0.3).astype(jnp.float32)

    got2 = fusion_mse_loss(target2, pred2, y_hat2, y2, mask2, block_rows=16)
    jax.block_until_ready(got2)
    assert jnp.allclose(got2, ref_loss(target2, pred2, y_hat2, y2, mask2),
                        rtol=1e-5, atol=1e-5)

    print("KERNEL_OK")
</pallas_src>

<mosaic_0001>
module attributes {stable_mosaic.version = 11 : i64} {
  func.func @_fused_kernel(%arg0: i32, %arg1: i32, %arg2: memref<16x128xf32, #tpu.memory_space<vmem>>, %arg3: memref<16x128xf32, #tpu.memory_space<vmem>>, %arg4: memref<16x128xf32, #tpu.memory_space<vmem>>, %arg5: memref<1x16xf32, #tpu.memory_space<vmem>>, %arg6: memref<1x16xf32, #tpu.memory_space<vmem>>, %arg7: memref<8x128xf32, #tpu.memory_space<vmem>>, %arg8: memref<8x128xf32, #tpu.memory_space<vmem>>, %arg9: memref<8x128xf32, #tpu.memory_space<vmem>>, %arg10: memref<16x128xf32, #tpu.memory_space<vmem>>, %arg11: memref<16x128xf32, #tpu.memory_space<vmem>>) attributes {dimension_semantics = [#tpu.dimension_semantics<parallel>, #tpu.dimension_semantics<arbitrary>], iteration_bounds = array<i64: 1, 1>, scalar_prefetch = 0 : i64, scratch_operands = 2 : i64, tpu.core_type = #tpu.core_type<tc>, window_params = [{transform_indices = @transform_0, window_bounds = array<i64: 16, 128>}, {transform_indices = @transform_1, window_bounds = array<i64: 16, 128>}, {transform_indices = @transform_2, window_bounds = array<i64: 16, 128>}, {pipeline_mode = #tpu.pipeline_mode<synchronous>, transform_indices = @transform_3, window_bounds = array<i64: 1, 16>}, {pipeline_mode = #tpu.pipeline_mode<synchronous>, transform_indices = @transform_4, window_bounds = array<i64: 1, 16>}, {transform_indices = @transform_5, window_bounds = array<i64: 8, 128>}, {transform_indices = @transform_6, window_bounds = array<i64: 8, 128>}, {transform_indices = @transform_7, window_bounds = array<i64: 8, 128>}]} {
    %c0_i32 = arith.constant 0 : i32
    %0 = arith.cmpi eq, %arg1, %c0_i32 : i32
    %1 = arith.extui %0 : i1 to i32
    %c0_i32_0 = arith.constant 0 : i32
    %2 = arith.cmpi ne, %1, %c0_i32_0 : i32
    scf.if %2 {
      %cst_17 = arith.constant 0.000000e+00 : f32
      %29 = vector.broadcast %cst_17 : f32 to vector<16x128xf32>
      %c0_18 = arith.constant 0 : index
      %c0_19 = arith.constant 0 : index
      %30 = vector.load %arg10[%c0_18, %c0_19] : memref<16x128xf32, #tpu.memory_space<vmem>>, vector<16x128xf32>
      tpu.vector_store %arg10[%c0_18, %c0_19], %29 {strides = array<i32>} : memref<16x128xf32, #tpu.memory_space<vmem>>, vector<16x128xf32>,
      %cst_20 = arith.constant 0.000000e+00 : f32
      %31 = vector.broadcast %cst_20 : f32 to vector<16x128xf32>
      %c0_21 = arith.constant 0 : index
      %c0_22 = arith.constant 0 : index
      %32 = vector.load %arg11[%c0_21, %c0_22] : memref<16x128xf32, #tpu.memory_space<vmem>>, vector<16x128xf32>
      tpu.vector_store %arg11[%c0_21, %c0_22], %31 {strides = array<i32>} : memref<16x128xf32, #tpu.memory_space<vmem>>, vector<16x128xf32>,
    } else {
    }
    %c1_i32 = arith.constant 1 : i32
    %3 = arith.muli %arg0, %c1_i32 : i32
    %4 = arith.addi %3, %arg1 : i32
    %c16_i32 = arith.constant 16 : i32
    %5 = arith.muli %4, %c16_i32 : i32
    %6 = tpu.iota {dimensions = array<i32: 0>} : vector<16x128xi32>
    %7 = vector.broadcast %5 : i32 to vector<16x128xi32>
    %8 = arith.addi %6, %7 : vector<16x128xi32>
    %c16_i32_1 = arith.constant 16 : i32
    %9 = vector.broadcast %c16_i32_1 : i32 to vector<16x128xi32>
    %10 = arith.cmpi slt, %8, %9 : vector<16x128xi32>
    %c0 = arith.constant 0 : index
    %c0_2 = arith.constant 0 : index
    %11 = vector.load %arg2[%c0, %c0_2] : memref<16x128xf32, #tpu.memory_space<vmem>>, vector<16x128xf32>
    %c0_3 = arith.constant 0 : index
    %c0_4 = arith.constant 0 : index
    %12 = vector.load %arg3[%c0_3, %c0_4] : memref<16x128xf32, #tpu.memory_space<vmem>>, vector<16x128xf32>
    %c0_5 = arith.constant 0 : index
    %c0_6 = arith.constant 0 : index
    %13 = vector.load %arg4[%c0_5, %c0_6] : memref<16x128xf32, #tpu.memory_space<vmem>>, vector<16x128xf32>
    %14 = arith.subf %12, %11 : vector<16x128xf32>
    %15 = arith.mulf %14, %13 : vector<16x128xf32>
    %cst = arith.constant 0.000000e+00 : f32
    %16 = vector.broadcast %cst : f32 to vector<16x128xf32>
    %c0_7 = arith.constant 0 : index
    %c0_8 = arith.constant 0 : index
    %17 = vector.load %arg10[%c0_7, %c0_8] : memref<16x128xf32, #tpu.memory_space<vmem>>, vector<16x128xf32>
    %18 = arith.mulf %15, %15 : vector<16x128xf32>
    %19 = arith.select %10, %18, %16 : vector<16x128xi1>, vector<16x128xf32>
    %20 = arith.addf %17, %19 : vector<16x128xf32>
    %c0_9 = arith.constant 0 : index
    %c0_10 = arith.constant 0 : index
    %21 = vector.load %arg10[%c0_9, %c0_10] : memref<16x128xf32, #tpu.memory_space<vmem>>, vector<16x128xf32>
    tpu.vector_store %arg10[%c0_9, %c0_10], %20 {strides = array<i32>} : memref<16x128xf32, #tpu.memory_space<vmem>>, vector<16x128xf32>,
    %c0_11 = arith.constant 0 : index
    %c0_12 = arith.constant 0 : index
    %22 = vector.load %arg11[%c0_11, %c0_12] : memref<16x128xf32, #tpu.memory_space<vmem>>, vector<16x128xf32>
    %23 = arith.select %10, %13, %16 : vector<16x128xi1>, vector<16x128xf32>
    %24 = arith.addf %22, %23 : vector<16x128xf32>
    %c0_13 = arith.constant 0 : index
    %c0_14 = arith.constant 0 : index
    %25 = vector.load %arg11[%c0_13, %c0_14] : memref<16x128xf32, #tpu.memory_space<vmem>>, vector<16x128xf32>
    tpu.vector_store %arg11[%c0_13, %c0_14], %24 {strides = array<i32>} : memref<16x128xf32, #tpu.memory_space<vmem>>, vector<16x128xf32>,
    %c0_i32_15 = arith.constant 0 : i32
    %26 = arith.cmpi eq, %arg1, %c0_i32_15 : i32
    %27 = arith.extui %26 : i1 to i32
    %c0_i32_16 = arith.constant 0 : i32
    %28 = arith.cmpi ne, %27, %c0_i32_16 : i32
    scf.if %28 {
      %29 = tpu.iota {dimensions = array<i32: 0>} : vector<8x128xi32>
      %30 = tpu.iota {dimensions = array<i32: 1>} : vector<8x128xi32>
      %c0_i32_17 = arith.constant 0 : i32
      %31 = vector.broadcast %c0_i32_17 : i32 to vector<8x128xi32>
      %32 = arith.cmpi eq, %29, %31 : vector<8x128xi32>
      %c0_i32_18 = arith.constant 0 : i32
      %33 = vector.broadcast %c0_i32_18 : i32 to vector<8x128xi32>
      %34 = arith.cmpi eq, %30, %33 : vector<8x128xi32>
      %35 = arith.andi %32, %34 : vector<8x128xi1>
      %cst_19 = arith.constant 0.000000e+00 : f32
      %36 = vector.broadcast %cst_19 : f32 to vector<8x128xf32>
      %c0_20 = arith.constant 0 : index
      %c0_21 = arith.constant 0 : index
      %37 = vector.load %arg10[%c0_20, %c0_21] : memref<16x128xf32, #tpu.memory_space<vmem>>, vector<16x128xf32>
      %38 = vector.shape_cast %37 : vector<16x128xf32> to vector<1x16x128xf32>
      %cst_22 = arith.constant dense<0.000000e+00> : vector<1xf32>
      %39 = vector.multi_reduction <add>, %38, %cst_22 [1, 2] : vector<1x16x128xf32> to vector<1xf32>
      %40 = vector.shape_cast %39 : vector<1xf32> to vector<1x1x1xf32>
      %41 = vector.extract %40[0, 0, 0] : f32 from vector<1x1x1xf32>
      %42 = vector.broadcast %41 : f32 to vector<8x128xf32>
      %43 = arith.select %35, %42, %36 : vector<8x128xi1>, vector<8x128xf32>
      %c0_23 = arith.constant 0 : index
      %c0_24 = arith.constant 0 : index
      %44 = vector.load %arg7[%c0_23, %c0_24] : memref<8x128xf32, #tpu.memory_space<vmem>>, vector<8x128xf32>
      tpu.vector_store %arg7[%c0_23, %c0_24], %43 {strides = array<i32>} : memref<8x128xf32, #tpu.memory_space<vmem>>, vector<8x128xf32>,
      %c0_25 = arith.constant 0 : index
      %c0_26 = arith.constant 0 : index
      %45 = vector.load %arg11[%c0_25, %c0_26] : memref<16x128xf32, #tpu.memory_space<vmem>>, vector<16x128xf32>
      %46 = vector.shape_cast %45 : vector<16x128xf32> to vector<1x16x128xf32>
      %cst_27 = arith.constant dense<0.000000e+00> : vector<1xf32>
      %47 = vector.multi_reduction <add>, %46, %cst_27 [1, 2] : vector<1x16x128xf32> to vector<1xf32>
      %48 = vector.shape_cast %47 : vector<1xf32> to vector<1x1x1xf32>
      %49 = vector.extract %48[0, 0, 0] : f32 from vector<1x1x1xf32>
      %50 = vector.broadcast %49 : f32 to vector<8x128xf32>
      %51 = arith.select %35, %50, %36 : vector<8x128xi1>, vector<8x128xf32>
      %c0_28 = arith.constant 0 : index
      %c0_29 = arith.constant 0 : index
      %52 = vector.load %arg8[%c0_28, %c0_29] : memref<8x128xf32, #tpu.memory_space<vmem>>, vector<8x128xf32>
      tpu.vector_store %arg8[%c0_28, %c0_29], %51 {strides = array<i32>} : memref<8x128xf32, #tpu.memory_space<vmem>>, vector<8x128xf32>,
      %c0_30 = arith.constant 0 : index
      %c0_31 = arith.constant 0 : index
      %53 = vector.load %arg5[%c0_30, %c0_31] : memref<1x16xf32, #tpu.memory_space<vmem>>, vector<1x16xf32>
      %c0_32 = arith.constant 0 : index
      %c0_33 = arith.constant 0 : index
      %54 = vector.load %arg6[%c0_32, %c0_33] : memref<1x16xf32, #tpu.memory_space<vmem>>, vector<1x16xf32>
      %55 = arith.subf %53, %54 : vector<1x16xf32>
      %c0_i32_34 = arith.constant 0 : i32
      %56 = arith.cmpi eq, %arg0, %c0_i32_34 : i32
      %57 = vector.broadcast %56 : i1 to vector<8x128xi1>
      %58 = arith.andi %35, %57 : vector<8x128xi1>
      %59 = arith.mulf %55, %55 : vector<1x16xf32>
      %60 = vector.shape_cast %59 : vector<1x16xf32> to vector<1x1x16xf32>
      %cst_35 = arith.constant dense<0.000000e+00> : vector<1xf32>
      %61 = vector.multi_reduction <add>, %60, %cst_35 [1, 2] : vector<1x1x16xf32> to vector<1xf32>
      %62 = vector.shape_cast %61 : vector<1xf32> to vector<1x1x1xf32>
      %63 = vector.extract %62[0, 0, 0] : f32 from vector<1x1x1xf32>
      %64 = vector.broadcast %63 : f32 to vector<8x128xf32>
      %65 = arith.select %58, %64, %36 : vector<8x128xi1>, vector<8x128xf32>
      %c0_36 = arith.constant 0 : index
      %c0_37 = arith.constant 0 : index
      %66 = vector.load %arg9[%c0_36, %c0_37] : memref<8x128xf32, #tpu.memory_space<vmem>>, vector<8x128xf32>
      tpu.vector_store %arg9[%c0_36, %c0_37], %65 {strides = array<i32>} : memref<8x128xf32, #tpu.memory_space<vmem>>, vector<8x128xf32>,
    } else {
    }
    return
  }
  func.func @transform_0(%arg0: i32, %arg1: i32) -> (i32, i32) {
    %c1_i32 = arith.constant 1 : i32
    %0 = arith.muli %arg0, %c1_i32 : i32
    %1 = arith.addi %0, %arg1 : i32
    %c0_i32 = arith.constant 0 : i32
    %2 = arith.minsi %1, %c0_i32 : i32
    %c0_i32_0 = arith.constant 0 : i32
    %c0_i32_1 = arith.constant 0 : i32
    return %2, %c0_i32_0 : i32, i32
  }
  func.func @transform_1(%arg0: i32, %arg1: i32) -> (i32, i32) {
    %c1_i32 = arith.constant 1 : i32
    %0 = arith.muli %arg0, %c1_i32 : i32
    %1 = arith.addi %0, %arg1 : i32
    %c0_i32 = arith.constant 0 : i32
    %2 = arith.minsi %1, %c0_i32 : i32
    %c0_i32_0 = arith.constant 0 : i32
    %c0_i32_1 = arith.constant 0 : i32
    return %2, %c0_i32_0 : i32, i32
  }
  func.func @transform_2(%arg0: i32, %arg1: i32) -> (i32, i32) {
    %c1_i32 = arith.constant 1 : i32
    %0 = arith.muli %arg0, %c1_i32 : i32
    %1 = arith.addi %0, %arg1 : i32
    %c0_i32 = arith.constant 0 : i32
    %2 = arith.minsi %1, %c0_i32 : i32
    %c0_i32_0 = arith.constant 0 : i32
    %c0_i32_1 = arith.constant 0 : i32
    return %2, %c0_i32_0 : i32, i32
  }
  func.func @transform_3(%arg0: i32, %arg1: i32) -> (i32, i32) {
    %c0_i32 = arith.constant 0 : i32
    %c0_i32_0 = arith.constant 0 : i32
    %c0_i32_1 = arith.constant 0 : i32
    return %c0_i32, %c0_i32_0 : i32, i32
  }
  func.func @transform_4(%arg0: i32, %arg1: i32) -> (i32, i32) {
    %c0_i32 = arith.constant 0 : i32
    %c0_i32_0 = arith.constant 0 : i32
    %c0_i32_1 = arith.constant 0 : i32
    return %c0_i32, %c0_i32_0 : i32, i32
  }
  func.func @transform_5(%arg0: i32, %arg1: i32) -> (i32, i32) {
    %c0_i32 = arith.constant 0 : i32
    %c0_i32_0 = arith.constant 0 : i32
    return %arg0, %c0_i32 : i32, i32
  }
  func.func @transform_6(%arg0: i32, %arg1: i32) -> (i32, i32) {
    %c0_i32 = arith.constant 0 : i32
    %c0_i32_0 = arith.constant 0 : i32
    return %arg0, %c0_i32 : i32, i32
  }
  func.func @transform_7(%arg0: i32, %arg1: i32) -> (i32, i32) {
    %c0_i32 = arith.constant 0 : i32
    %c0_i32_0 = arith.constant 0 : i32
    return %arg0, %c0_i32 : i32, i32
  }
}

</mosaic_0001>

<bundles_post_ra>
// kernel: _fused_loss.1
= control target key start
LH: loop header
LB: loop body
LE: loop exit
PB: predicated region body
PF: predicated region fallthrough
CT: control target
= control target key end

     0   :  { %vm212_vm0 = vcmask 122880   ;;  %v129_v40 = vlaneseq  ;;  %s335_s3 = inlined_call_operand.vmem [shape: f32[1,16], index: 3, kind: input, shape index: {}]   ;;  %s336_s4 = inlined_call_operand.vmem [shape: f32[1,16], index: 4, kind: input, shape index: {}]   ;;  %s337_s0 = inlined_call_operand.vmem [shape: f32[16,128], index: 0, kind: input, shape index: {}]   ;;  %s338_s1 = inlined_call_operand.vmem [shape: f32[16,128], index: 1, kind: input, shape index: {}]   ;;  %s339_s2 = inlined_call_operand.vmem [shape: f32[16,128], index: 2, kind: input, shape index: {}]   ;;  %s340_s5 = inlined_call_operand.vmem [shape: f32[8,128], index: 5, kind: output, shape index: {0}]   ;;  %s341_s6 = inlined_call_operand.vmem [shape: f32[8,128], index: 6, kind: output, shape index: {1}]   ;;  %s342_s7 = inlined_call_operand.vmem [shape: f32[8,128], index: 7, kind: output, shape index: {2}]  }
   0x1   :  { %v203_v0 = vld [vmem:[%s335_s3] sm:$0x1]  ;;  %v138_v4 = vld [vmem:[%s337_s0 + $0x8] sm:$0xff] }
   0x2   :  { %v204_v1 = vld [vmem:[%s336_s4] sm:$0x1]  ;;  %v140_v6 = vld [vmem:[%s338_s1 + $0x8] sm:$0xff]  ;;  %v130_v41 = vshrl.u32 %v129_v40, 7  ;;  %v169_v42 = vand.u32 127, %v129_v40 }
   0x3   :  { %v137_v2 = vld [vmem:[%s337_s0] sm:$0xff]  ;;  %v205_v3 = vsub.f32 %v203_v0, %v204_v1  ;;  %v142_v8 = vld [vmem:[%s339_s2 + $0x8] sm:$0xff]  ;;  %v144_v10 = vsub.f32 %v140_v6, %v138_v4 }
   0x4   :  { %v139_v5 = vld [vmem:[%s338_s1] sm:$0xff]  ;;  %vm170_vm1 = vcmp.eq.s32.totalorder %v130_v41, 0  ;;  %vm171_vm2 = vcmp.eq.s32.totalorder %v169_v42, 0 }
   0x5   :  { %v141_v7 = vld [vmem:[%s339_s2] sm:$0xff]  ;;  %v143_v9 = vsub.f32 %v139_v5, %v137_v2  ;;  %v211_v11 = vmul.f32 %v205_v3, %v205_v3  ;;  %v146_v13 = vmul.f32 %v144_v10, %v142_v8  ;;  %vm172_vm3 = vmand %vm170_vm1, %vm171_vm2 }
   0x6   :  { %v190_v18 = vadd.f32 %v142_v8, %v141_v7 }
   0x7   :  { %v145_v12 = vmul.f32 %v143_v9, %v141_v7  ;;  %v213_v14 = vsel %vm212_vm0, %v211_v11, 0.0  ;;  %v150_v16 = vmul.f32 %v146_v13, %v146_v13 }
   0x8   :  { %214 = vadd.xlane.f32.xlu1 %v213_v14 }
   0x9   :  { %v149_v15 = vmul.f32 %v145_v12, %v145_v12 }
   0xb   :  { %v175_v17 = vadd.f32 %v150_v16, %v149_v15 }
   0xd   :  { %176 = vadd.xlane.f32.xlu0 %v175_v17 }
  0x11   :  { %191 = vadd.xlane.f32.xlu0 %v190_v18 }
  0x95   :  { %v215_v19 = vpop.xlane.xlu1 %214 }
  0x96   :  { %v216_v20 = vrot.slane %v215_v19, 4 }
  0x98   :  { %v217_v21 = vadd.f32 %v216_v20, %v215_v19 }
  0x9a   :  { %v177_v22 = vpop.xlane.xlu0 %176  ;;  %v218_v25 = vrot.slane %v217_v21, 2 }
  0x9b   :  { %v178_v23 = vrot.slane %v177_v22, 4 }
  0x9c   :  { %v219_v31 = vadd.f32 %v218_v25, %v217_v21 }
  0x9d   :  { %v179_v24 = vadd.f32 %v178_v23, %v177_v22 }
  0x9e   :  { %v192_v26 = vpop.xlane.xlu0 %191  ;;  %v220_v36 = vrot.slane %v219_v31, 1 }
  0x9f   :  { %v180_v27 = vrot.slane %v179_v24, 2  ;;  %v193_v28 = vrot.slane %v192_v26, 4 }
  0xa0   :  { %v221_v39 = vadd.f32 %v220_v36, %v219_v31 }
  0xa1   :  { %v194_v29 = vadd.f32 %v193_v28, %v192_v26  ;;  %v181_v30 = vadd.f32 %v180_v27, %v179_v24 }
  0xa3   :  { %v195_v32 = vrot.slane %v194_v29, 2  ;;  %v182_v33 = vrot.slane %v181_v30, 1 }
  0xa5   :  { %v196_v34 = vadd.f32 %v195_v32, %v194_v29  ;;  %v183_v35 = vadd.f32 %v182_v33, %v181_v30 }
  0xa7   :  { %256 = vpush %v183_v35  ;;  %v197_v37 = vrot.slane %v196_v34, 1 }
  0xa9   :  { %v198_v38 = vadd.f32 %v197_v37, %v196_v34 }
  0xab   :  { %258 = vpush %v198_v38 }
  0xac   :  { %260 = vpush %v221_v39 }
  0xd8   :  { %s257_s0 = spop %256 }
  0xd9   :  { %v185_v43 = vstv %s257_s0 }
  0xda   :  { %v186_v44 = vsel %vm172_vm3, %v185_v43, 0.0 }
  0xdb   :  { %187 = vst [vmem:[%s340_s5] sm:$0xff] %v186_v44 }
  0xdc   :  { %s259_s15 = spop %258 }
  0xdd   :  { %v200_v45 = vstv %s259_s15  ;;  %s261_s16 = spop %260 }
  0xde   :  { %v201_v46 = vsel %vm172_vm3, %v200_v45, 0.0  ;;  %v223_v47 = vstv %s261_s16 }
  0xdf   :  { %202 = vst [vmem:[%s341_s6] sm:$0xff] %v201_v46  ;;  %v224_v48 = vsel %vm172_vm3, %v223_v47, 0.0 }
  0xe0   :  { %225 = vst [vmem:[%s342_s7] sm:$0xff] %v224_v48 }

</bundles_post_ra>
